<compile_context>
chip_gen: v7x
topology: tpu7x:2x2x1
jax: 0.10.0
libtpu: 0.0.40
codegen_flags: <defaults>
</compile_context>

<pallas_src>
import functools

import jax
import jax.numpy as jnp
from jax.experimental import pallas as pl
from jax.experimental.pallas import tpu as pltpu

LANES = 128
TILE_ROWS = 2048              # 2048 x 128 x 4 B = 1 MiB per f32 input block
_ALIGN = 8 * LANES            # 1024: guarantees rows % 8 == 0 after (rare) pad


# ---------------------------------------------------------------------------
# Kernels
# ---------------------------------------------------------------------------
def _l1_partial_sum_kernel(s_ref, t_ref, o_ref, *, block_rows, valid_rows,
                           need_mask):
    """Per-block partial sums of |s - t|, written as an (8, 128) tile."""
    diff = s_ref[...].astype(jnp.float32) - t_ref[...].astype(jnp.float32)
    absd = jnp.abs(diff)
    if need_mask:
        # Last grid block extends past the array; mask garbage rows.
        row = (pl.program_id(0) * block_rows
               + jax.lax.broadcasted_iota(jnp.int32, absd.shape, 0))
        absd = jnp.where(row < valid_rows, absd, 0.0)
    # (block_rows, 128) -> (block_rows//8, 8, 128); reducing the leading axis
    # is plain vreg-wise VPU adds (no cross-lane / XLU work, no scalar RMW).
    o_ref[...] = absd.reshape(block_rows // 8, 8, LANES).sum(axis=0)


def _l1_elem_kernel(s_ref, t_ref, o_ref, *, loss_weight):
    """Elementwise loss_weight * |s - t| (reduction='none')."""
    diff = s_ref[...].astype(jnp.float32) - t_ref[...].astype(jnp.float32)
    o_ref[...] = (loss_weight * jnp.abs(diff)).astype(o_ref.dtype)


# ---------------------------------------------------------------------------
# Wrapper
# ---------------------------------------------------------------------------
def _as_lane_dense_2d(x):
    """Flatten to (rows, 128) with rows % 8 == 0.

    Only pads (i.e. copies) when the element count is not already a multiple
    of 1024; for typical aligned feature tensors this is a free reshape.
    """
    flat = x.reshape(-1)
    n = flat.shape[0]
    n_pad = ((n + _ALIGN - 1) // _ALIGN) * _ALIGN
    if n_pad != n:
        flat = jnp.pad(flat, (0, n_pad - n))   # rare ragged case only
    return flat.reshape(-1, LANES), n


def l1_loss(s_feature, t_feature, *, loss_weight=1.0, reduction="mean"):
    """Pallas implementation of mmrazor L1Loss.forward.

    Matches torch.nn.functional.l1_loss semantics for reduction in
    {'none', 'mean', 'sum'} and scales the result by loss_weight.
    """
    assert s_feature.shape == t_feature.shape
    assert reduction in ("none", "mean", "sum", "batchmean")

    s2d, n = _as_lane_dense_2d(s_feature)
    t2d, _ = _as_lane_dense_2d(t_feature)
    rows = s2d.shape[0]
    block_rows = min(TILE_ROWS, rows)          # both multiples of 8
    num_blocks = pl.cdiv(rows, block_rows)
    need_mask = (rows % block_rows) != 0       # static (shapes are static)
    itemsize = s2d.dtype.itemsize
    bytes_in = 2 * rows * LANES * itemsize

    if reduction == "none":
        out2d = pl.pallas_call(
            functools.partial(_l1_elem_kernel, loss_weight=float(loss_weight)),
            out_shape=jax.ShapeDtypeStruct((rows, LANES), s_feature.dtype),
            grid_spec=pltpu.PrefetchScalarGridSpec(
                num_scalar_prefetch=0,
                grid=(num_blocks,),
                in_specs=[
                    pl.BlockSpec((block_rows, LANES), lambda i: (i, 0)),
                    pl.BlockSpec((block_rows, LANES), lambda i: (i, 0)),
                ],
                out_specs=pl.BlockSpec((block_rows, LANES), lambda i: (i, 0)),
            ),
            compiler_params=pltpu.CompilerParams(
                dimension_semantics=("parallel",)),
            cost_estimate=pl.CostEstimate(
                flops=3 * rows * LANES,
                transcendentals=0,
                bytes_accessed=bytes_in + rows * LANES * itemsize),
        )(s2d, t2d)
        out_flat = out2d.reshape(-1)
        if out_flat.shape[0] != n:
            out_flat = out_flat[:n]            # ragged (rare) case only
        return out_flat.reshape(s_feature.shape)

    # 'mean', 'sum' (and 'batchmean').
    # TODO(synk): torch F.l1_loss raises on reduction='batchmean'; here it is
    # silently treated like 'sum' (same behavior as the previous version).
    partials = pl.pallas_call(
        functools.partial(_l1_partial_sum_kernel, block_rows=block_rows,
                          valid_rows=rows, need_mask=need_mask),
        out_shape=jax.ShapeDtypeStruct((num_blocks * 8, LANES), jnp.float32),
        grid_spec=pltpu.PrefetchScalarGridSpec(
            num_scalar_prefetch=0,
            grid=(num_blocks,),
            in_specs=[
                pl.BlockSpec((block_rows, LANES), lambda i: (i, 0)),
                pl.BlockSpec((block_rows, LANES), lambda i: (i, 0)),
            ],
            out_specs=pl.BlockSpec((8, LANES), lambda i: (i, 0)),
        ),
        compiler_params=pltpu.CompilerParams(
            dimension_semantics=("parallel",)),
        cost_estimate=pl.CostEstimate(
            flops=3 * rows * LANES,
            transcendentals=0,
            bytes_accessed=bytes_in + num_blocks * 8 * LANES * 4),
    )(s2d, t2d)

    total = jnp.sum(partials)                  # tiny final reduce in XLA
    if reduction == "mean":
        total = total / jnp.float32(n)
    loss = jnp.float32(loss_weight) * total
    return loss.astype(s_feature.dtype)


# ---------------------------------------------------------------------------
# Demo / self-test
# ---------------------------------------------------------------------------
if __name__ == "__main__":
    key = jax.random.PRNGKey(0)
    k1, k2 = jax.random.split(key)

    # Student / teacher features, NCHW as in the PyTorch module docstring.
    s = jax.random.normal(k1, (2, 4, 16, 16), dtype=jnp.float32)
    t = jax.random.normal(k2, (2, 4, 16, 16), dtype=jnp.float32)

    loss_weight = 1.0

    loss_mean = l1_loss(s, t, loss_weight=loss_weight, reduction="mean")
    loss_sum = l1_loss(s, t, loss_weight=loss_weight, reduction="sum")
    loss_none = l1_loss(s, t, loss_weight=loss_weight, reduction="none")

    jax.block_until_ready((loss_mean, loss_sum, loss_none))

    # Reference checks against plain JAX (same semantics as F.l1_loss).
    ref_mean = loss_weight * jnp.mean(jnp.abs(s - t))
    ref_sum = loss_weight * jnp.sum(jnp.abs(s - t))
    ref_none = loss_weight * jnp.abs(s - t)

    assert jnp.allclose(loss_mean, ref_mean, rtol=1e-5, atol=1e-5)
    assert jnp.allclose(loss_sum, ref_sum, rtol=1e-4, atol=1e-4)
    assert jnp.allclose(loss_none, ref_none, rtol=1e-5, atol=1e-5)
    assert loss_none.shape == s.shape

    print("KERNEL_OK")
</pallas_src>

<mosaic_0001>
module attributes {stable_mosaic.version = 11 : i64} {
  func.func @_l1_partial_sum_kernel(%arg0: i32, %arg1: memref<16x128xf32, #tpu.memory_space<vmem>>, %arg2: memref<16x128xf32, #tpu.memory_space<vmem>>, %arg3: memref<8x128xf32, #tpu.memory_space<vmem>>) attributes {dimension_semantics = [#tpu.dimension_semantics<parallel>], iteration_bounds = array<i64: 1>, scalar_prefetch = 0 : i64, scratch_operands = 0 : i64, tpu.core_type = #tpu.core_type<tc>, window_params = [{transform_indices = @transform_0, window_bounds = array<i64: 16, 128>}, {transform_indices = @transform_1, window_bounds = array<i64: 16, 128>}, {transform_indices = @transform_2, window_bounds = array<i64: 8, 128>}]} {
    %c0 = arith.constant 0 : index
    %c0_0 = arith.constant 0 : index
    %0 = vector.load %arg1[%c0, %c0_0] : memref<16x128xf32, #tpu.memory_space<vmem>>, vector<16x128xf32>
    %c0_1 = arith.constant 0 : index
    %c0_2 = arith.constant 0 : index
    %1 = vector.load %arg2[%c0_1, %c0_2] : memref<16x128xf32, #tpu.memory_space<vmem>>, vector<16x128xf32>
    %2 = arith.subf %0, %1 : vector<16x128xf32>
    %3 = math.absf %2 : vector<16x128xf32>
    %4 = vector.shape_cast %3 : vector<16x128xf32> to vector<2x8x128xf32>
    %cst = arith.constant dense<0.000000e+00> : vector<8x128xf32>
    %5 = vector.multi_reduction <add>, %4, %cst [0] : vector<2x8x128xf32> to vector<8x128xf32>
    %c0_3 = arith.constant 0 : index
    %c0_4 = arith.constant 0 : index
    %6 = vector.load %arg3[%c0_3, %c0_4] : memref<8x128xf32, #tpu.memory_space<vmem>>, vector<8x128xf32>
    tpu.vector_store %arg3[%c0_3, %c0_4], %5 {strides = array<i32>} : memref<8x128xf32, #tpu.memory_space<vmem>>, vector<8x128xf32>,
    return
  }
  func.func @transform_0(%arg0: i32) -> (i32, i32) {
    %c0_i32 = arith.constant 0 : i32
    %c0_i32_0 = arith.constant 0 : i32
    return %arg0, %c0_i32 : i32, i32
  }
  func.func @transform_1(%arg0: i32) -> (i32, i32) {
    %c0_i32 = arith.constant 0 : i32
    %c0_i32_0 = arith.constant 0 : i32
    return %arg0, %c0_i32 : i32, i32
  }
  func.func @transform_2(%arg0: i32) -> (i32, i32) {
    %c0_i32 = arith.constant 0 : i32
    %c0_i32_0 = arith.constant 0 : i32
    return %arg0, %c0_i32 : i32, i32
  }
}

</mosaic_0001>

<bundles_post_ra>
// kernel: tpu_custom_call.1
= control target key start
LH: loop header
LB: loop body
LE: loop exit
PB: predicated region body
PF: predicated region fallthrough
CT: control target
= control target key end

     0   :  { %7 = vsyncpa [#allocation3], 0  ;;  %s199_s0 = inlined_call_operand.hbm [shape: f32[16,128], index: 0, kind: input, shape index: {}]   ;;  %s200_s1 = inlined_call_operand.hbm [shape: f32[16,128], index: 1, kind: input, shape index: {}]   ;;  %s201_s2 = inlined_call_operand.hbm [shape: f32[8,128], index: 2, kind: output, shape index: {}]  }
   0x1   :  { %8 = vsyncpa [#allocation6], 0 }
   0x2   :  { %9 = vsyncpa [#allocation4], 0  ;;  %s143_s9 = smov [#allocation2]   ;;  %s71_s13 = scalar_lea.hbm %s199_s0, 256 }
   0x3   :  { %s15_s10 = sshll.u32 %s143_s9, 4  ;;  %p72_p0 = scmp.ne.s32.totalorder %s199_s0, %s71_s13  ;;  %s16_s10 = int_to_ptr.vmem [resolvable:$true] %s15_s10 }
   0x4   :  { %p75_p1 = scmp.lt.u32.totalorder %s71_s13, %s199_s0 }
   0x6   :  { %p77_p2 = pnand %p75_p1, %p72_p0 }
   0x8   :  { %80 = shalt.err (!%p77_p2)
}
   0x9   :  { %s81_s18 = scalar_lea.vmem %s16_s10, 256  ;;  %p86_p4 = scmp.lt.s32.totalorder %s16_s10, %s16_s10 }
   0xa   :  { %p82_p3 = scmp.ne.s32.totalorder %s16_s10, %s81_s18  ;;  %p87_p5 = scmp.lt.s32.totalorder %s81_s18, %s81_s18 }
   0xc   :  { %p88_p6 = por %p87_p5, %p86_p4 }
   0xe   :  { %p89_p7 = pnand %p88_p6, %p82_p3 }
  0x10   :  { %92 = shalt.err (!%p89_p7)
}
  0x11   :  { %s144_s19 = smov 128   ;;  %s145_s20 = smov 8  }
  0x12   :  { %21 = dma.hbm_to_vmem [thread:$0]  %s199_s0, 256, %s16_s10, [#allocation3], %s144_s19, %s144_s19, %s145_s20  }
  0x13   :  { %s146_s23 = smov [#allocation5]   ;;  %s93_s27 = scalar_lea.hbm %s200_s1, 256 }
  0x14   :  { %s27_s24 = sshll.u32 %s146_s23, 4  ;;  %p94_p8 = scmp.ne.s32.totalorder %s200_s1, %s93_s27  ;;  %s28_s24 = int_to_ptr.vmem [resolvable:$true] %s27_s24 }
  0x15   :  { %p97_p9 = scmp.lt.u32.totalorder %s93_s27, %s200_s1 }
  0x17   :  { %p99_p10 = pnand %p97_p9, %p94_p8 }
  0x19   :  { %102 = shalt.err (!%p99_p10)
}
  0x1a   :  { %s103_s4 = scalar_lea.vmem %s28_s24, 256  ;;  %p108_p12 = scmp.lt.s32.totalorder %s28_s24, %s28_s24 }
  0x1b   :  { %p104_p11 = scmp.ne.s32.totalorder %s28_s24, %s103_s4  ;;  %p109_p13 = scmp.lt.s32.totalorder %s103_s4, %s103_s4 }
  0x1d   :  { %p110_p0 = por %p109_p13, %p108_p12 }
  0x1f   :  { %p111_p1 = pnand %p110_p0, %p104_p11 }
  0x21   :  { %114 = shalt.err (!%p111_p1)
}
  0x22   :  { %33 = dma.hbm_to_vmem [thread:$0]  %s200_s1, 256, %s28_s24, [#allocation6], %s144_s19, %s144_s19, %s145_s20  }
  0x23   :  { %137 = dma.done.wait [#allocation3], 256  }
  0x24   :  { %138 = vsyncadd [#allocation3], 4294967040 }
  0x25   :  { %139 = dma.done.wait [#allocation6], 256  }
  0x26   :  { %140 = vsyncadd [#allocation6], 4294967040  ;;  %v40_v0 = vld [vmem:[#allocation2] sm:$0xff]  ;;  %v41_v1 = vld [vmem:[#allocation2 + $0x8] sm:$0xff]  ;;  %s147_s6 = smov [#allocation7]  }
  0x27   :  { %v42_v2 = vld [vmem:[#allocation5] sm:$0xff]  ;;  %v43_v3 = vld [vmem:[#allocation5 + $0x8] sm:$0xff]  ;;  %s56_s7 = sshll.u32 %s147_s6, 4  ;;  %s57_s7 = int_to_ptr.vmem [resolvable:$true] %s56_s7 }
  0x28   :  { %v44_v4 = vsub.f32 %v40_v0, %v42_v2  ;;  %v45_v5 = vsub.f32 %v41_v1, %v43_v3  ;;  %s115_s8 = scalar_lea.vmem %s57_s7, 128  ;;  %p120_p3 = scmp.lt.s32.totalorder %s57_s7, %s57_s7 }
  0x29   :  { %p116_p2 = scmp.ne.s32.totalorder %s57_s7, %s115_s8  ;;  %p121_p4 = scmp.lt.s32.totalorder %s115_s8, %s115_s8 }
  0x2a   :  { %v46_v6 = vand.u32 2147483647, %v44_v4  ;;  %v47_v7 = vand.u32 2147483647, %v45_v5 }
  0x2b   :  { %p122_p5 = por %p121_p4, %p120_p3 }
  0x2c   :  { %v48_v8 = vadd.f32 %v47_v7, %v46_v6 }
  0x2d   :  { %p123_p6 = pnand %p122_p5, %p116_p2 }
  0x2e   :  { %49 = vst [vmem:[#allocation7] sm:$0xff] %v48_v8 }
  0x2f   :  { %126 = shalt.err (!%p123_p6)
}
  0x30   :  { %s127_s10 = scalar_lea.hbm %s201_s2, 128 }
  0x31   :  { %p128_p7 = scmp.ne.s32.totalorder %s201_s2, %s127_s10  ;;  %p131_p8 = scmp.lt.u32.totalorder %s127_s10, %s201_s2 }
  0x33   :  { %p133_p9 = pnand %p131_p8, %p128_p7 }
  0x35   :  { %136 = shalt.err (!%p133_p9)
}
  0x36   :  { %59 = dma.vmem_to_hbm [thread:$0]  %s57_s7, 128, %s201_s2, [#allocation4]  }
  0x37   :  { %141 = dma.done.wait [#allocation4], 128  }
  0x38   :  { %142 = vsyncadd [#allocation4], 4294967168 }
  0x39   :  { %63 = vsyncpa [#allocation3], 1 }
  0x3a   :  { %64 = vsyncpa [#allocation6], 1 }
  0x3b   :  { %65 = vsyncpa [#allocation4], 1 }

</bundles_post_ra>
